<compile_context>
chip_gen: v7x
topology: tpu7x:2x2x1
jax: 0.10.0
libtpu: 0.0.40
codegen_flags: <defaults>
</compile_context>

<pallas_src>
import jax
import jax.numpy as jnp
from jax.experimental import pallas as pl
from jax.experimental.pallas import tpu as pltpu


def _concat_dma_kernel(x_ref, xi_ref, o_ref, sem):
    # x_ref:  (R, cx)       raw HBM ref
    # xi_ref: (R, ci)       raw HBM ref
    # o_ref:  (R, cx + ci)  raw HBM ref
    cx = x_ref.shape[1]
    ci = xi_ref.shape[1]

    # Two whole-array strided DMAs; destination rows have stride cx + ci.
    cp_x = pltpu.make_async_copy(x_ref, o_ref.at[:, pl.ds(0, cx)], sem.at[0])
    cp_xi = pltpu.make_async_copy(xi_ref, o_ref.at[:, pl.ds(cx, ci)], sem.at[1])
    cp_x.start()
    cp_xi.start()
    cp_x.wait()
    cp_xi.wait()


def concatenate(x: jax.Array, x_initial: jax.Array, dim: int = 1) -> jax.Array:
    """Pallas equivalent of torch.cat([x, x_initial], dim=dim)."""
    assert x.ndim == x_initial.ndim, "rank mismatch"
    nd = x.ndim
    d = dim % nd
    assert x.shape[:d] == x_initial.shape[:d], "non-concat dims must match"
    assert x.shape[d + 1:] == x_initial.shape[d + 1:], "non-concat dims must match"
    assert x.dtype == x_initial.dtype

    out_full_shape = x.shape[:d] + (x.shape[d] + x_initial.shape[d],) + x.shape[d + 1:]

    outer = 1
    for s in x.shape[:d]:
        outer *= s
    inner_x = 1
    for s in x.shape[d:]:
        inner_x *= s
    inner_xi = 1
    for s in x_initial.shape[d:]:
        inner_xi *= s

    itemsize = jnp.dtype(x.dtype).itemsize

    # Small-chunk fallback: DMA efficiency collapses for tiny per-row
    # contiguous chunks (descriptor-bound, partial-burst writes).
    if min(inner_x, inner_xi) * itemsize < 512:
        return jnp.concatenate([x, x_initial], axis=d)

    # Contiguous-view reshapes (no data movement for contiguous inputs).
    x_flat = x.reshape(outer, inner_x)
    xi_flat = x_initial.reshape(outer, inner_xi)

    out_flat = pl.pallas_call(
        _concat_dma_kernel,
        out_shape=jax.ShapeDtypeStruct((outer, inner_x + inner_xi), x.dtype),
        grid_spec=pltpu.PrefetchScalarGridSpec(
            num_scalar_prefetch=0,
            grid=(1,),  # single step: two whole-array strided DMAs
            in_specs=[
                pl.BlockSpec(memory_space=pl.ANY),
                pl.BlockSpec(memory_space=pl.ANY),
            ],
            out_specs=pl.BlockSpec(memory_space=pl.ANY),
            scratch_shapes=[pltpu.SemaphoreType.DMA((2,))],
        ),
        compiler_params=pltpu.CompilerParams(
            dimension_semantics=("arbitrary",),
            has_side_effects=True,
        ),
        cost_estimate=pl.CostEstimate(
            flops=0,
            transcendentals=0,
            bytes_accessed=2 * (x.size + x_initial.size) * itemsize,
        ),
    )(x_flat, xi_flat)

    return out_flat.reshape(out_full_shape)


if __name__ == "__main__":
    key = jax.random.PRNGKey(0)
    k1, k2 = jax.random.split(key)

    # Small NCHW inputs: x has 4 channels, x_initial has 3 channels.
    x = jax.random.normal(k1, (2, 4, 16, 16), dtype=jnp.float32)
    x_initial = jax.random.normal(k2, (2, 3, 16, 16), dtype=jnp.float32)

    out = concatenate(x, x_initial, dim=1)
    out = jax.block_until_ready(out)

    # Verify against plain-JAX reference (matches torch.cat semantics).
    ref = jnp.concatenate([x, x_initial], axis=1)
    assert out.shape == (2, 7, 16, 16)
    assert out.dtype == x.dtype
    assert jnp.array_equal(out, ref)

    print("KERNEL_OK")
</pallas_src>

<mosaic_0001>
module attributes {stable_mosaic.version = 11 : i64} {
  func.func @_concat_dma_kernel(%arg0: i32, %arg1: memref<2x1024xf32, #tpu.memory_space<any>>, %arg2: memref<2x768xf32, #tpu.memory_space<any>>, %arg3: memref<2x1792xf32, #tpu.memory_space<any>>, %arg4: memref<2x!tpu.dma_semaphore, #tpu.memory_space<semaphore_mem>>) attributes {dimension_semantics = [#tpu.dimension_semantics<arbitrary>], iteration_bounds = array<i64: 1>, scalar_prefetch = 0 : i64, scratch_operands = 1 : i64, tpu.core_type = #tpu.core_type<tc>, window_params = [{}, {}, {}]} {
    %c0_i32 = arith.constant 0 : i32
    %c0_i32_0 = arith.constant 0 : i32
    %c0_i32_1 = arith.constant 0 : i32
    %0 = tpu.memref_slice %arg3[%c0_i32_0, %c0_i32_1] : memref<2x1792xf32, #tpu.memory_space<any>> -> memref<2x1024xf32, #tpu.memory_space<any>>
    %1 = tpu.memref_slice %arg4[%c0_i32] : memref<2x!tpu.dma_semaphore, #tpu.memory_space<semaphore_mem>> -> memref<1x!tpu.dma_semaphore, #tpu.memory_space<semaphore_mem>>
    %2 = tpu.memref_squeeze %1 : memref<1x!tpu.dma_semaphore, #tpu.memory_space<semaphore_mem>> -> memref<!tpu.dma_semaphore, #tpu.memory_space<semaphore_mem>>
    tpu.enqueue_dma source(%arg1 : memref<2x1024xf32, #tpu.memory_space<any>>) target(%0 : memref<2x1024xf32, #tpu.memory_space<any>>) target_semaphore(%2 : memref<!tpu.dma_semaphore, #tpu.memory_space<semaphore_mem>>)
    %c1_i32 = arith.constant 1 : i32
    %c0_i32_2 = arith.constant 0 : i32
    %c1024_i32 = arith.constant 1024 : i32
    %3 = tpu.memref_slice %arg3[%c0_i32_2, %c1024_i32] : memref<2x1792xf32, #tpu.memory_space<any>> -> memref<2x768xf32, #tpu.memory_space<any>>
    %4 = tpu.memref_slice %arg4[%c1_i32] : memref<2x!tpu.dma_semaphore, #tpu.memory_space<semaphore_mem>> -> memref<1x!tpu.dma_semaphore, #tpu.memory_space<semaphore_mem>>
    %5 = tpu.memref_squeeze %4 : memref<1x!tpu.dma_semaphore, #tpu.memory_space<semaphore_mem>> -> memref<!tpu.dma_semaphore, #tpu.memory_space<semaphore_mem>>
    tpu.enqueue_dma source(%arg2 : memref<2x768xf32, #tpu.memory_space<any>>) target(%3 : memref<2x768xf32, #tpu.memory_space<any>>) target_semaphore(%5 : memref<!tpu.dma_semaphore, #tpu.memory_space<semaphore_mem>>)
    %c0_i32_3 = arith.constant 0 : i32
    %c0_i32_4 = arith.constant 0 : i32
    %c0_i32_5 = arith.constant 0 : i32
    %6 = tpu.memref_slice %arg3[%c0_i32_4, %c0_i32_5] : memref<2x1792xf32, #tpu.memory_space<any>> -> memref<2x1024xf32, #tpu.memory_space<any>>
    %7 = tpu.memref_slice %arg4[%c0_i32_3] : memref<2x!tpu.dma_semaphore, #tpu.memory_space<semaphore_mem>> -> memref<1x!tpu.dma_semaphore, #tpu.memory_space<semaphore_mem>>
    %8 = tpu.memref_squeeze %7 : memref<1x!tpu.dma_semaphore, #tpu.memory_space<semaphore_mem>> -> memref<!tpu.dma_semaphore, #tpu.memory_space<semaphore_mem>>
    tpu.wait_dma2 semaphore(%8 : memref<!tpu.dma_semaphore, #tpu.memory_space<semaphore_mem>>) src(%arg1 : memref<2x1024xf32, #tpu.memory_space<any>>) dst(%6 : memref<2x1024xf32, #tpu.memory_space<any>>)
    %c1_i32_6 = arith.constant 1 : i32
    %c0_i32_7 = arith.constant 0 : i32
    %c1024_i32_8 = arith.constant 1024 : i32
    %9 = tpu.memref_slice %arg3[%c0_i32_7, %c1024_i32_8] : memref<2x1792xf32, #tpu.memory_space<any>> -> memref<2x768xf32, #tpu.memory_space<any>>
    %10 = tpu.memref_slice %arg4[%c1_i32_6] : memref<2x!tpu.dma_semaphore, #tpu.memory_space<semaphore_mem>> -> memref<1x!tpu.dma_semaphore, #tpu.memory_space<semaphore_mem>>
    %11 = tpu.memref_squeeze %10 : memref<1x!tpu.dma_semaphore, #tpu.memory_space<semaphore_mem>> -> memref<!tpu.dma_semaphore, #tpu.memory_space<semaphore_mem>>
    tpu.wait_dma2 semaphore(%11 : memref<!tpu.dma_semaphore, #tpu.memory_space<semaphore_mem>>) src(%arg2 : memref<2x768xf32, #tpu.memory_space<any>>) dst(%9 : memref<2x768xf32, #tpu.memory_space<any>>)
    return
  }
}

</mosaic_0001>

<bundles_post_ra>
// kernel: tpu_custom_call.1
= control target key start
LH: loop header
LB: loop body
LE: loop exit
PB: predicated region body
PF: predicated region fallthrough
CT: control target
= control target key end

     0   :  { %s66_s12 = smov [#allocation2]   ;;  %s67_s13 = smov [#allocation3]   ;;  %s98_s0 = inlined_call_operand.hbm [shape: f32[2,1024], index: 0, kind: input, shape index: {}]   ;;  %s99_s2 = inlined_call_operand.hbm [shape: f32[2,1792], index: 2, kind: output, shape index: {}]   ;;  %s100_s1 = inlined_call_operand.hbm [shape: f32[2,768], index: 1, kind: input, shape index: {}]  }
   0x1   :  { %s20_s11 = scalar_lea.hbm %s99_s2, 256  ;;  %s68_s14 = smov 0  }
   0x2   :  { %19 = dma.general %s98_s0, 256, %s99_s2, %s66_s12, %s67_s13, [#allocation4], %s68_s14, 0  }
   0x3   :  { %s69_s19 = smov [#allocation2 + $0x1]   ;;  %s70_s20 = smov [#allocation5]  }
   0x4   :  { %34 = dma.general %s100_s1, 192, %s20_s11, %s69_s19, %s70_s20, [#allocation6], %s68_s14, 0  }
   0x5   :  { %62 = dma.done.wait [#allocation2], 256 }
   0x6   :  { %63 = vsyncadd [#allocation2], 4294967040 }
   0x7   :  { %64 = dma.done.wait [#allocation2 + $0x1], 192 }
   0x8   :  { %65 = vsyncadd [#allocation2 + $0x1], 4294967104 }
   0x9   :  { %42 = vsyncmov [#allocation2] }
   0xc   :  { %s43_s23 = vpop.sfrf %42 }
   0xd   :  { %p55_p0 = scmp.ne.s32.totalorder %s43_s23, 0 }
   0xf   :  { %47 = shalt.err (%p55_p0)  }
  0x10   :  { %49 = vsyncmov [#allocation2 + $0x1] }
  0x13   :  { %s50_s24 = vpop.sfrf %49 }
  0x14   :  { %p56_p1 = scmp.ne.s32.totalorder %s50_s24, 0 }
  0x16   :  { %54 = shalt.err (%p56_p1)  }

</bundles_post_ra>
